<compile_context>
chip_gen: v7x
topology: tpu7x:2x2x1
jax: 0.10.0
libtpu: 0.0.40
codegen_flags: <defaults>
</compile_context>

<pallas_src>
import functools

import jax
import jax.numpy as jnp
from jax.experimental import pallas as pl
from jax.experimental.pallas import tpu as pltpu

MARGIN = 1.2
STRIP = 512  # max lane-width of in-kernel strips (bounds f32 intermediates)


def _round_up(x, m):
    return ((x + m - 1) // m) * m


def _vmem_budget_bytes():
    # Per-chip working-set budget, kept well under the 32 MiB scoped limit we
    # request below (v7x physical VMEM is only 64 MiB vs 128 MiB on v5e/v6e).
    try:
        cap = pltpu.get_tpu_info().vmem_capacity_bytes
    except Exception:
        cap = 128 * 1024 * 1024
    return min(24 * 1024 * 1024, cap // 4)


def _footprint(tb, td, itemsize):
    # 3 inputs x 2 pipeline buffers + ~4 live f32 strip temporaries + output.
    inputs = 3 * 2 * tb * td * itemsize
    temps = 4 * tb * min(td, STRIP) * 4
    out = 2 * tb * 4
    return inputs + temps + out


def _choose_tiles(batch, dim, itemsize):
    """Pick (tb, td). td == dim (single D tile, no feature padding) whenever
    the footprint allows it; only truly huge D falls back to a tiled D axis."""
    budget = _vmem_budget_bytes()

    if _footprint(8, dim, itemsize) <= budget:
        td = dim            # full feature dim: exempt from the /128 rule
    else:
        td = 512            # rare: very large D, tile the feature axis

    tb = 8
    while tb * 2 <= 1024 and _footprint(tb * 2, td, itemsize) <= budget:
        tb *= 2

    # Keep >=4 batch tiles when the batch is large enough so the "parallel"
    # axis can shard across v7x's two TensorCores (free on v5e/v6e).
    if batch >= 32:
        tb = min(tb, max(8, _round_up(-(-batch // 4), 8)))

    if batch <= 8:
        tb = batch                       # block == full batch dim (exempt)
    else:
        tb = min(tb, (batch // 8) * 8)   # never larger than the array
    return tb, td


def _strip_row_sums(a_ref, p_ref, n_ref, tb, td):
    """sum_D((a-p)^2 - (a-n)^2) in f32, computed on lane strips loaded
    directly from the refs so live intermediates stay <= (tb, STRIP)."""
    row = jnp.zeros((tb, 1), jnp.float32)
    off = 0
    while off < td:
        w = min(STRIP, td - off)
        a = a_ref[:, off:off + w].astype(jnp.float32)
        p = p_ref[:, off:off + w].astype(jnp.float32)
        n = n_ref[:, off:off + w].astype(jnp.float32)
        dp = a - p
        dn = a - n
        row = row + jnp.sum(dp * dp - dn * dn, axis=1, keepdims=True)
        off += w
    return row


def _kernel_single(a_ref, p_ref, n_ref, o_ref, *, true_batch, margin):
    # Common path: whole feature dim in one tile; no scratch, no pl.when.
    tb, td = a_ref.shape
    row = _strip_row_sums(a_ref, p_ref, n_ref, tb, td)
    rows = pl.program_id(0) * tb + jax.lax.broadcasted_iota(jnp.int32, (tb, 1), 0)
    valid = rows < true_batch
    o_ref[...] = jnp.where(valid, jnp.maximum(row + margin, 0.0), 0.0)


def _kernel_tiled(a_ref, p_ref, n_ref, o_ref, acc_ref, *, true_batch, margin):
    # Rare path: very large D, reduced across the second grid axis.
    d_idx = pl.program_id(1)
    tb, td = a_ref.shape

    @pl.when(d_idx == 0)
    def _():
        acc_ref[...] = jnp.zeros_like(acc_ref)

    acc_ref[...] += _strip_row_sums(a_ref, p_ref, n_ref, tb, td)

    @pl.when(d_idx == pl.num_programs(1) - 1)
    def _():
        rows = (pl.program_id(0) * tb
                + jax.lax.broadcasted_iota(jnp.int32, (tb, 1), 0))
        valid = rows < true_batch
        o_ref[...] = jnp.where(valid, jnp.maximum(acc_ref[...] + margin, 0.0), 0.0)


def triplet_loss(anchor, positive, negative, margin=MARGIN):
    """Pallas implementation of TripletLoss(margin).forward."""
    batch, dim = anchor.shape
    itemsize = jnp.dtype(anchor.dtype).itemsize
    tb, td = _choose_tiles(batch, dim, itemsize)
    nb = pl.cdiv(batch, tb)  # last batch block may overhang; masked in-kernel

    cost = pl.CostEstimate(
        flops=8 * batch * dim,
        transcendentals=0,
        bytes_accessed=3 * batch * dim * itemsize + 4 * batch,
    )

    if td == dim:
        per_row = pl.pallas_call(
            functools.partial(_kernel_single, true_batch=batch,
                              margin=float(margin)),
            out_shape=jax.ShapeDtypeStruct((batch, 1), jnp.float32),
            grid_spec=pltpu.PrefetchScalarGridSpec(
                num_scalar_prefetch=0,
                grid=(nb,),
                in_specs=[pl.BlockSpec((tb, dim), lambda i: (i, 0))] * 3,
                out_specs=pl.BlockSpec((tb, 1), lambda i: (i, 0)),
            ),
            compiler_params=pltpu.CompilerParams(
                dimension_semantics=("parallel",),
                vmem_limit_bytes=32 * 1024 * 1024,
            ),
            cost_estimate=cost,
        )(anchor, positive, negative)
    else:
        # Very large D only: pad D to a multiple of td (zero columns add 0).
        dpad = _round_up(dim, td)
        if dpad != dim:
            pad = lambda x: jnp.pad(x, ((0, 0), (0, dpad - dim)))
            anchor, positive, negative = pad(anchor), pad(positive), pad(negative)
        per_row = pl.pallas_call(
            functools.partial(_kernel_tiled, true_batch=batch,
                              margin=float(margin)),
            out_shape=jax.ShapeDtypeStruct((batch, 1), jnp.float32),
            grid_spec=pltpu.PrefetchScalarGridSpec(
                num_scalar_prefetch=0,
                grid=(nb, dpad // td),
                in_specs=[pl.BlockSpec((tb, td), lambda i, d: (i, d))] * 3,
                out_specs=pl.BlockSpec((tb, 1), lambda i, d: (i, 0)),
                scratch_shapes=[pltpu.VMEM((tb, 1), jnp.float32)],
            ),
            compiler_params=pltpu.CompilerParams(
                dimension_semantics=("parallel", "arbitrary"),
                vmem_limit_bytes=32 * 1024 * 1024,
            ),
            cost_estimate=cost,
        )(anchor, positive, negative)

    # Invalid (overhanging) rows were written as 0; divide by the true batch.
    return jnp.sum(per_row) / batch


def triplet_loss_ref(anchor, positive, negative, margin=MARGIN):
    a = anchor.astype(jnp.float32)
    p = positive.astype(jnp.float32)
    n = negative.astype(jnp.float32)
    dpos = jnp.sum((a - p) ** 2, axis=1)
    dneg = jnp.sum((a - n) ** 2, axis=1)
    return jnp.mean(jnp.maximum(dpos - dneg + margin, 0.0))


if __name__ == "__main__":
    key = jax.random.PRNGKey(0)
    ka, kp, kn = jax.random.split(key, 3)

    # Face-embedding-like shapes; deliberately NOT multiples of (8, 128) to
    # exercise the overhanging-batch-block mask and the full-dim feature block.
    B, D = 10, 192
    anchor = jax.random.normal(ka, (B, D), dtype=jnp.float32)
    positive = jax.random.normal(kp, (B, D), dtype=jnp.float32)
    negative = jax.random.normal(kn, (B, D), dtype=jnp.float32)

    loss = jax.block_until_ready(triplet_loss(anchor, positive, negative))
    ref = jax.block_until_ready(triplet_loss_ref(anchor, positive, negative))

    assert jnp.allclose(loss, ref, rtol=1e-5, atol=1e-5), (loss, ref)
    print("KERNEL_OK")
</pallas_src>

<mosaic_0001>
module attributes {stable_mosaic.version = 11 : i64} {
  func.func @_kernel_single(%arg0: i32, %arg1: memref<8x192xf32, #tpu.memory_space<vmem>>, %arg2: memref<8x192xf32, #tpu.memory_space<vmem>>, %arg3: memref<8x192xf32, #tpu.memory_space<vmem>>, %arg4: memref<8x1xf32, #tpu.memory_space<vmem>>) attributes {dimension_semantics = [#tpu.dimension_semantics<parallel>], iteration_bounds = array<i64: 2>, scalar_prefetch = 0 : i64, scratch_operands = 0 : i64, tpu.core_type = #tpu.core_type<tc>, window_params = [{transform_indices = @transform_0, window_bounds = array<i64: 8, 192>}, {transform_indices = @transform_1, window_bounds = array<i64: 8, 192>}, {transform_indices = @transform_2, window_bounds = array<i64: 8, 192>}, {transform_indices = @transform_3, window_bounds = array<i64: 8, 1>}]} {
    %cst = arith.constant 0.000000e+00 : f32
    %0 = vector.broadcast %cst : f32 to vector<8x1xf32>
    %c0 = arith.constant 0 : index
    %c0_0 = arith.constant 0 : index
    %1 = vector.load %arg1[%c0, %c0_0] : memref<8x192xf32, #tpu.memory_space<vmem>>, vector<8x192xf32>
    %c0_1 = arith.constant 0 : index
    %c0_2 = arith.constant 0 : index
    %2 = vector.load %arg2[%c0_1, %c0_2] : memref<8x192xf32, #tpu.memory_space<vmem>>, vector<8x192xf32>
    %c0_3 = arith.constant 0 : index
    %c0_4 = arith.constant 0 : index
    %3 = vector.load %arg3[%c0_3, %c0_4] : memref<8x192xf32, #tpu.memory_space<vmem>>, vector<8x192xf32>
    %4 = arith.subf %1, %2 : vector<8x192xf32>
    %5 = arith.subf %1, %3 : vector<8x192xf32>
    %6 = arith.mulf %4, %4 : vector<8x192xf32>
    %7 = arith.mulf %5, %5 : vector<8x192xf32>
    %8 = arith.subf %6, %7 : vector<8x192xf32>
    %cst_5 = arith.constant dense<0.000000e+00> : vector<8xf32>
    %9 = vector.multi_reduction <add>, %8, %cst_5 [1] : vector<8x192xf32> to vector<8xf32>
    %10 = vector.shape_cast %9 : vector<8xf32> to vector<8x1xf32>
    %11 = arith.addf %0, %10 : vector<8x1xf32>
    %c8_i32 = arith.constant 8 : i32
    %12 = arith.muli %arg0, %c8_i32 : i32
    %13 = tpu.iota {dimensions = array<i32: 0>} : vector<8x1xi32>
    %14 = vector.broadcast %12 : i32 to vector<8x1xi32>
    %15 = arith.addi %14, %13 : vector<8x1xi32>
    %c10_i32 = arith.constant 10 : i32
    %16 = vector.broadcast %c10_i32 : i32 to vector<8x1xi32>
    %17 = arith.cmpi slt, %15, %16 : vector<8x1xi32>
    %cst_6 = arith.constant 1.200000e+00 : f32
    %18 = vector.broadcast %cst_6 : f32 to vector<8x1xf32>
    %19 = arith.addf %11, %18 : vector<8x1xf32>
    %cst_7 = arith.constant 0.000000e+00 : f32
    %20 = vector.broadcast %cst_7 : f32 to vector<8x1xf32>
    %21 = arith.maximumf %19, %20 : vector<8x1xf32>
    %cst_8 = arith.constant 0.000000e+00 : f32
    %22 = vector.broadcast %cst_8 : f32 to vector<8x1xf32>
    %23 = arith.select %17, %21, %22 : vector<8x1xi1>, vector<8x1xf32>
    %c0_9 = arith.constant 0 : index
    %c0_10 = arith.constant 0 : index
    %24 = vector.load %arg4[%c0_9, %c0_10] : memref<8x1xf32, #tpu.memory_space<vmem>>, vector<8x1xf32>
    tpu.vector_store %arg4[%c0_9, %c0_10], %23 {strides = array<i32>} : memref<8x1xf32, #tpu.memory_space<vmem>>, vector<8x1xf32>,
    return
  }
  func.func @transform_0(%arg0: i32) -> (i32, i32) {
    %c0_i32 = arith.constant 0 : i32
    %c0_i32_0 = arith.constant 0 : i32
    return %arg0, %c0_i32 : i32, i32
  }
  func.func @transform_1(%arg0: i32) -> (i32, i32) {
    %c0_i32 = arith.constant 0 : i32
    %c0_i32_0 = arith.constant 0 : i32
    return %arg0, %c0_i32 : i32, i32
  }
  func.func @transform_2(%arg0: i32) -> (i32, i32) {
    %c0_i32 = arith.constant 0 : i32
    %c0_i32_0 = arith.constant 0 : i32
    return %arg0, %c0_i32 : i32, i32
  }
  func.func @transform_3(%arg0: i32) -> (i32, i32) {
    %c0_i32 = arith.constant 0 : i32
    %c0_i32_0 = arith.constant 0 : i32
    return %arg0, %c0_i32 : i32, i32
  }
}

</mosaic_0001>

<bundles_post_ra>
// kernel: tpu_custom_call.1
= control target key start
LH: loop header
LB: loop body
LE: loop exit
PB: predicated region body
PF: predicated region fallthrough
CT: control target
= control target key end

     0   :  { %8 = vsyncpa [#allocation3], 0  ;;  %s816_s0 = inlined_call_operand.hbm [shape: f32[10,192], index: 0, kind: input, shape index: {}]   ;;  %s817_s1 = inlined_call_operand.hbm [shape: f32[10,192], index: 1, kind: input, shape index: {}]   ;;  %s818_s2 = inlined_call_operand.hbm [shape: f32[10,192], index: 2, kind: input, shape index: {}]   ;;  %s819_s3 = inlined_call_operand.vmem [shape: f32[10,1], index: 3, kind: output, shape index: {}]  }
   0x1   :  { %10 = vsyncpa [#allocation3 + $0x1], 0 }
   0x2   :  { %11 = vsyncpa [#allocation5], 0 }
   0x3   :  { %13 = vsyncpa [#allocation5 + $0x1], 0  ;;  %s626_s12 = smov 0   ;;  %s628_s13 = smov 0  }
   0x4   :  { %s630_s14 = smov 0   ;;  %s632_s15 = smov 0  }
   0x5 LB: > { %s645_s16 = sadd.s32 4294967295, %s601_s15   ;;  %s648_s17 = sadd.s32 1, %s601_s15   ;;  %s601_s15 = sphi %s632_s15, %s834_s15   ;;  %s597_s14 = sphi %s630_s14, %s833_s14   ;;  %s593_s13 = sphi %s628_s13, %s832_s13   ;;  %s589_s12 = sphi %s626_s12, %s831_s12  }
   0x6   : > { %s23_s18 = ssub.s32 %s601_s15, %s648_s17  ;;  %s26_s19 = sadd.s32 1, %s597_s14 }
   0x7   : > { %p24_p0 = scmp.eq.s32.totalorder %s23_s18, 0  ;;  %p33_p1 = scmp.ne.s32.totalorder %s597_s14, %s593_s13 }
   0x8   : > { %p34_p2 = scmp.eq.s32.totalorder %s601_s15, 0  ;;  %p39_p3 = scmp.ne.s32.totalorder %s593_s13, %s589_s12 }
   0x9   : > { %s658_s20 = scalar_select %p24_p0, %s597_s14, %s26_s19  }
   0xa   : > { %p35_p4 = por %p34_p2, %p33_p1  ;;  %p40_p5 = scmp.eq.s32.totalorder %s645_s16, 0 }
   0xb   : > { %p440_p6 = scmp.lt.s32.totalorder %s601_s15, 2  ;;  %s141_s22 = sand.u32 1, %s597_s14  }
   0xc   : > { %p662_p7 = por %p40_p5, %p39_p3  ;;  %s669_s23 = sshll.u32 %s141_s22, 4 }
   0xd   : > { %s672_s24 = sshll.u32 %s601_s15, 8  ;;  %p674_p8 = pnand %p440_p6, %p35_p4 }
   0xe   : > { %s822_s21 = scalar_select %p662_p7, 1, 0 }
   0xf   : > { %s823_s25 = scalar_select %p674_p8, 1, 0 }
  0x10   : > { %s160_s26 = sand.u32 1, %s601_s15   ;;  %s683_s29 = scalar_lea.hbm %s817_s1, %s672_s24 }
  0x11   : > { %s164_s30 = scalar_lea.vmem [#allocation4], %s669_s23  ;;  %s690_s5 = scalar_lea.sflag [#allocation5], %s160_s26 }
  0x12   : > { %s172_s4 = sshll.u32 %s164_s30, 4  ;;  %s473_s6 = scalar_lea.hbm %s683_s29, 256  ;;  %s687_s4 = int_to_ptr.vmem [resolvable:$true] %s172_s4 }
  0x13   : > { %p474_p11 = scmp.ne.s32.totalorder %s683_s29, %s473_s6  ;;  %p696_p12 = pneg %p674_p8 }
  0x14   : > { %s478_s10 = scalar_lea.hbm %s817_s1, 512  ;;  %p479_p1 = scmp.lt.u32.totalorder %s683_s29, %s817_s1 }
  0x15   : > { %p476_p13 = pnand %p696_p12, %p474_p11  ;;  %p480_p2 = scmp.lt.u32.totalorder %s478_s10, %s473_s6 }
  0x16   : > { %p482_p4 = scmp.lt.u32.totalorder %s473_s6, %s683_s29 }
  0x17   : > { %p477_p0 = pneg %p476_p13  ;;  %p481_p3 = por %p480_p2, %p479_p1 }
  0x19   : > { %p483_p5 = por %p482_p4, %p481_p3 }
  0x1b   : > { %p484_p6 = pnand %p483_p5, %p477_p0 }
  0x1d   : > { %487 = shalt.err (!%p484_p6)
}
  0x1e   : > { %s488_s18 = scalar_lea.vmem %s687_s4, 256  ;;  %s603_s19 = smov [#allocation4]  }
  0x1f   : > { %p489_p11 = scmp.ne.s32.totalorder %s687_s4, %s488_s18  ;;  %s493_s26 = sshll.u32 %s603_s19, 4  ;;  %s494_s26 = int_to_ptr.vmem [resolvable:$false] %s493_s26 }
  0x20   : > { %s495_s27 = scalar_lea.vmem %s494_s26, 512  ;;  %p496_p10 = scmp.lt.s32.totalorder %s687_s4, %s494_s26 }
  0x21   : > { %p491_p13 = pnand %p489_p11, %p696_p12  ;;  %p497_p7 = scmp.lt.s32.totalorder %s495_s27, %s488_s18 }
  0x23   : > { %p492_p9 = pneg %p491_p13  ;;  %p498_p1 = por %p497_p7, %p496_p10 }
  0x25   : > { %p499_p2 = pnand %p498_p1, %p492_p9 }
  0x27   : > { %502 = shalt.err (!%p499_p2)
}
  0x28   : > { %436 = dma.hbm_to_vmem [thread:$0]  (!%p674_p8), %s683_s29, 256, %s687_s4, %s690_s5  }
  0x29   : > { %p825_p0 = scmp.lt.s32.totalorder %s601_s15, 3  ;;  %p826_p3 = scmp.ge.s32.totalorder %s601_s15, 1 }
  0x2a   : > { %s732_s8 = scalar_lea.hbm %s816_s0, %s672_s24  ;;  %s145_s9 = scalar_lea.vmem [#allocation2], %s669_s23 }
  0x2b   : > { %p724_p4 = pnand %p826_p3, %p825_p0  ;;  %s153_s10 = sshll.u32 %s145_s9, 4  ;;  %s735_s10 = int_to_ptr.vmem [resolvable:$true] %s153_s10 }
  0x2c   : > { %s741_s15 = scalar_lea.hbm %s818_s2, %s672_s24  ;;  %s142_s11 = scalar_lea.sflag [#allocation3], %s141_s22 }
  0x2d   : > { %s827_s28 = scalar_select %p724_p4, 1, 0 }
  0x2e   : > { %s503_s12 = scalar_lea.hbm %s732_s8, 256  ;;  %s508_s26 = scalar_lea.hbm %s816_s0, 512 }
  0x2f   : > { %p504_p7 = scmp.ne.s32.totalorder %s732_s8, %s503_s12  ;;  %p509_p5 = scmp.lt.u32.totalorder %s732_s8, %s816_s0 }
  0x30   : > { %p510_p6 = scmp.lt.u32.totalorder %s508_s26, %s503_s12  ;;  %p512_p13 = scmp.lt.u32.totalorder %s503_s12, %s732_s8 }
  0x31   : > { %p506_p9 = pnand %p504_p7, %p696_p12 }
  0x32   : > { %p511_p11 = por %p510_p6, %p509_p5 }
  0x33   : > { %p507_p10 = pneg %p506_p9 }
  0x34   : > { %p513_p1 = por %p512_p13, %p511_p11 }
  0x36   : > { %p514_p2 = pnand %p513_p1, %p507_p10 }
  0x38   : > { %517 = shalt.err (!%p514_p2)
}
  0x39   : > { %s518_s22 = scalar_lea.vmem %s735_s10, 256  ;;  %s604_s24 = smov [#allocation2]  }
  0x3a   : > { %p519_p0 = scmp.ne.s32.totalorder %s735_s10, %s518_s22  ;;  %s523_s6 = sshll.u32 %s604_s24, 4  ;;  %s524_s6 = int_to_ptr.vmem [resolvable:$false] %s523_s6 }
  0x3b   : > { %s525_s9 = scalar_lea.vmem %s524_s6, 512  ;;  %p526_p9 = scmp.lt.s32.totalorder %s735_s10, %s524_s6 }
  0x3c   : > { %p521_p3 = pnand %p519_p0, %p696_p12  ;;  %p527_p4 = scmp.lt.s32.totalorder %s525_s9, %s518_s22 }
  0x3e   : > { %p522_p7 = pneg %p521_p3  ;;  %p528_p5 = por %p527_p4, %p526_p9 }
  0x40   : > { %p529_p6 = pnand %p528_p5, %p522_p7 }
  0x42   : > { %532 = shalt.err (!%p529_p6)
}
  0x43   : > { %433 = dma.hbm_to_vmem [thread:$0]  (!%p674_p8), %s732_s8, 256, %s735_s10, %s142_s11  }
  0x44   : > { %s183_s29 = scalar_lea.vmem [#allocation6], %s669_s23  ;;  %s533_s12 = scalar_lea.hbm %s741_s15, 256 }
  0x45   : > { %s191_s4 = sshll.u32 %s183_s29, 4  ;;  %p534_p10 = scmp.ne.s32.totalorder %s741_s15, %s533_s12  ;;  %s192_s4 = int_to_ptr.vmem [resolvable:$true] %s191_s4 }
  0x46   : > { %s538_s26 = scalar_lea.hbm %s818_s2, 512  ;;  %p539_p13 = scmp.lt.u32.totalorder %s741_s15, %s818_s2 }
  0x47   : > { %p536_p4 = pnand %p534_p10, %p696_p12  ;;  %p540_p1 = scmp.lt.u32.totalorder %s538_s26, %s533_s12 }
  0x48   : > { %p542_p0 = scmp.lt.u32.totalorder %s533_s12, %s741_s15 }
  0x49   : > { %p537_p11 = pneg %p536_p4  ;;  %p541_p2 = por %p540_p1, %p539_p13 }
  0x4b   : > { %p543_p3 = por %p542_p0, %p541_p2 }
  0x4d   : > { %p544_p7 = pnand %p543_p3, %p537_p11 }
  0x4f   : > { %547 = shalt.err (!%p544_p7)
}
  0x50   : > { %s548_s23 = scalar_lea.vmem %s192_s4, 256  ;;  %s605_s8 = smov [#allocation6]  }
  0x51   : > { %p549_p9 = scmp.ne.s32.totalorder %s192_s4, %s548_s23  ;;  %s553_s10 = sshll.u32 %s605_s8, 4  ;;  %s554_s10 = int_to_ptr.vmem [resolvable:$false] %s553_s10 }
  0x52   : > { %s555_s11 = scalar_lea.vmem %s554_s10, 512  ;;  %p556_p10 = scmp.lt.s32.totalorder %s192_s4, %s554_s10 }
  0x53   : > { %p551_p5 = pnand %p549_p9, %p696_p12  ;;  %p557_p4 = scmp.lt.s32.totalorder %s555_s11, %s548_s23 }
  0x55   : > { %p552_p6 = pneg %p551_p5  ;;  %p558_p8 = por %p557_p4, %p556_p10 }
  0x57   : > { %p559_p1 = pnand %p558_p8, %p552_p6 }
  0x59   : > { %562 = shalt.err (!%p559_p1)
}
  0x5a   : > { %p828_p13 = scmp.ne.s32.totalorder %s823_s25, 0  ;;  %p829_p11 = scmp.ne.s32.totalorder %s827_s28, 0 }
  0x5b   : > { %s202_s7 = sand.u32 (!%p829_p11), 1, %s593_s13   ;;  %p830_p12 = scmp.ne.s32.totalorder (!%p829_p11), %s822_s21, 0 }
  0x5c   : > { %439 = dma.hbm_to_vmem [thread:$0]  (!%p828_p13), %s741_s15, 256, %s192_s4, %s690_s5  }
  0x5d   : > { %200 = sbr.rel (%p829_p11) target bundleno = 264 (0x108), region = 32  ;;  %s414_s22 = sshll.u32 (!%p829_p11), %s202_s7, 4 }
  0x5e   : > { %s203_s24 = scalar_lea.sflag (!%p829_p11), [#allocation3], %s202_s7  ;;  %s206_s6 = scalar_lea.vmem (!%p829_p11), [#allocation2], %s414_s22 }
  0x64   : > { %580 = dma.done.wait (%p830_p12), %s203_s24, 256  }
  0x65   : > { %582 = vsyncadd (%p830_p12), %s203_s24, 4294967040  ;;  %s211_s25 = sand.u32 1, %s645_s16   ;;  %s215_s29 = scalar_lea.vmem [#allocation4], %s414_s22 }
  0x66   : > { %s212_s9 = scalar_lea.sflag [#allocation5], %s211_s25 }
  0x67   : > { %584 = dma.done.wait (%p830_p12), %s212_s9, 512  }
  0x68   : > { %586 = vsyncadd (%p830_p12), %s212_s9, 4294966784  ;;  %v260_v0 = vld [vmem:[%s206_s6] sm:$0xff]  ;;  %v261_v1 = vld [vmem:[%s206_s6 + $0x8] sm:$0xff]  ;;  %s224_s5 = scalar_lea.vmem [#allocation6], %s414_s22  ;;  %vm276_vm0 = vcmask 523264   ;;  %v283_v18 = vlaneseq  ;;  %p256_p8 = scmp.lt.s32.totalorder %s645_s16, 1 }
  0x69   : > { %v262_v2 = vld [vmem:[%s215_s29] sm:$0xff]  ;;  %v263_v3 = vld [vmem:[%s215_s29 + $0x8] sm:$0xff]  ;;  %s418_s21 = sshll.u32 %s645_s16, 3  ;;  %vm291_vm2 = vcmask 7168  }
  0x6a   : > { %v264_v4 = vld [vmem:[%s224_s5] sm:$0xff]  ;;  %v265_v5 = vld [vmem:[%s224_s5 + $0x8] sm:$0xff]  ;;  %v266_v6 = vsub.f32 %v260_v0, %v262_v2  ;;  %v267_v7 = vsub.f32 %v261_v1, %v263_v3  ;;  %v284_v19 = vshrl.u32 %v283_v18, 7  ;;  %v285_v20 = vstv %s418_s21  ;;  %s836_s16 = smov (!%p256_p8, %s645_s16), 1 }
  0x6b   : > { %v268_v8 = vsub.f32 %v260_v0, %v264_v4  ;;  %v269_v9 = vsub.f32 %v261_v1, %v265_v5  ;;  %s417_s28 = sshll.u32 %s836_s16, 3 }
  0x6c   : > { %v270_v10 = vmul.f32 %v266_v6, %v266_v6  ;;  %v271_v11 = vmul.f32 %v267_v7, %v267_v7  ;;  %v286_v21 = vadd.s32 %v285_v20, %v284_v19  ;;  %s259_s12 = scalar_lea.vmem %s819_s3, %s417_s28 }
  0x6d   : > { %v272_v12 = vmul.f32 %v268_v8, %v268_v8  ;;  %v273_v13 = vmul.f32 %v269_v9, %v269_v9 }
  0x6e   : > { %vm287_vm1 = vcmp.lt.s32.totalorder %v286_v21, 10 }
  0x6f   : > { %v274_v14 = vsub.f32 %v270_v10, %v272_v12  ;;  %v275_v15 = vsub.f32 %v271_v11, %v273_v13 }
  0x71   : > { %v277_v16 = vsel %vm276_vm0, %v275_v15, 0.0 }
  0x72   : > { %v278_v17 = vadd.f32 %v277_v16, %v274_v14 }
  0x74   : > { %279 = vadd.xlane.f32.xlu0 %v278_v17 }
 0x101   : > { %v280_v22 = vpop.xlane.xlu0 %279 }
 0x102   : > { %v288_v23 = vadd.f32 1.2, %v280_v22 }
 0x104   : > { %v289_v24 = vmax.f32 %v288_v23, 0.0 }
 0x106   : > { %v290_v25 = vsel %vm287_vm1, %v289_v24, 0.0 }
 0x107   : > { %292 = vst.msk [vmem:[%s259_s12] sm:$0xff] %vm291_vm2, %v290_v25 }
 0x108 PF: > { %p16_p2 = scmp.ge.s32.totalorder %s648_s17, 4   ;;  %s831_s12 = smov %s593_s13 }
 0x109   : > { %s832_s13 = smov %s597_s14  ;;  %s833_s14 = smov %s658_s20 }
 0x10a   : > { %s834_s15 = smov %s648_s17  ;;  %18 = sbr.rel (!%p16_p2) target bundleno = 5 (0x5), region = 96 }
 0x111   :  { %312 = vsyncpa [#allocation3], 1 }
 0x112   :  { %314 = vsyncpa [#allocation3 + $0x1], 1 }
 0x113   :  { %315 = vsyncpa [#allocation5], 1 }
 0x114   :  { %317 = vsyncpa [#allocation5 + $0x1], 1 }

</bundles_post_ra>
